<compile_context>
chip_gen: v7x
topology: tpu7x:2x2x1
jax: 0.10.0
libtpu: 0.0.40
codegen_flags: <defaults>
</compile_context>

<pallas_src>
import functools

import jax
import jax.numpy as jnp
from jax.experimental import pallas as pl
from jax.experimental.pallas import tpu as pltpu


def _round_up(v, m):
    return ((v + m - 1) // m) * m


def nam_kernel(xT_ref, w1T_ref, b1_ref, w2a_ref, b2a_ref, total_ref, contribs_ref):
    """One batch tile; the batch lives on the 128-wide lane dimension throughout."""
    D = contribs_ref.shape[0]

    xT = xT_ref[...]                                   # (D, TB) features x batch

    # First per-feature Linear(1,H) + ReLU as one block-diagonal MXU matmul:
    #   h[i*H+k, b] = relu(w1[i,k] * x[b,i] + b1[i,k])
    h = jnp.dot(w1T_ref[...], xT, preferred_element_type=jnp.float32) + b1_ref[...]
    h = jnp.maximum(h, 0.0)                            # (D*H, TB)

    # Second Linear(H,1) *and* the additive feature sum fused into a single
    # (D+1, D*H) block-diagonal matmul: rows 0..D-1 -> contribs^T, row D -> total^T.
    out = jnp.dot(w2a_ref[...], h, preferred_element_type=jnp.float32) + b2a_ref[...]
    contribs_ref[...] = out[:D, :].astype(contribs_ref.dtype)
    total_ref[...] = out[D:, :].astype(total_ref.dtype)


def _block_diag(w):
    """(D, H) per-feature weights -> (D*H, D) block-diagonal matrix.

    Column i holds w[i, :] in rows i*H:(i+1)*H; everything else is an exact 0,
    so the matmul reproduces the per-feature Linear bit-for-bit up to f32
    summation order.
    """
    D, H = w.shape
    feat = jnp.arange(D * H) // H
    return jnp.where(feat[:, None] == jnp.arange(D)[None, :],
                     w.reshape(-1)[:, None],
                     jnp.zeros((), w.dtype)).astype(w.dtype)


def _pick_tile(B, DH, tb):
    """Clamp the batch tile and derive a VMEM limit that fits every TPU gen."""
    tb = max(128, (int(tb) // 128) * 128)          # lane multiple
    tb = min(tb, _round_up(B, 128))                # never tile beyond the batch
    if B > 128:
        # Keep >= 2 (roughly balanced) grid tiles so the "parallel" axis can be
        # sharded across v7x's two TensorCores.
        tb = min(tb, _round_up(-(-B // 2), 128))
    # Per-lane VMEM footprint: (DH, tb) f32 hidden intermediate + double-buffered
    # x / total / contribs tiles (each sublane-padded to 8 rows).
    per_lane = 4 * (DH + 56)
    budget = 44 * 1024 * 1024
    tb = min(tb, max(128, (budget // per_lane) // 128 * 128))
    vmem_limit = int(min(48 * 1024 * 1024,
                         max(32 * 1024 * 1024, per_lane * tb + 2 * 1024 * 1024)))
    return tb, vmem_limit


@functools.partial(jax.jit, static_argnames=("tb",))
def nam_forward_feature_major(xT, w1, b1, w2, b2, *, tb=32768):
    """Zero-copy fast path: xT is (D, B); returns (total^T (1,B), contribs^T (D,B))."""
    D, B = xT.shape
    H = w1.shape[1]
    DH = D * H

    tb, vmem_limit = _pick_tile(B, DH, tb)
    B_pad = _round_up(B, tb)
    n_tiles = B_pad // tb
    if B_pad != B:
        xT = jnp.pad(xT, ((0, 0), (0, B_pad - B)))

    # Block-diagonal weights (exact zeros off-block).
    w1T_blk = _block_diag(w1)                                        # (DH, D)
    b1_col = b1.reshape(DH, 1)                                       # (DH, 1)
    w2_blk = jnp.transpose(_block_diag(w2))                          # (D, DH)
    # Fold the additive feature sum into the second matmul (extra row / bias).
    w2_aug = jnp.concatenate([w2_blk, w2.reshape(1, DH)], axis=0)    # (D+1, DH)
    b2_aug = jnp.concatenate([b2.reshape(D, 1),
                              jnp.sum(b2).reshape(1, 1)], axis=0)    # (D+1, 1)

    rep = lambda i: (0, 0)                                           # grid-invariant params

    grid_spec = pltpu.PrefetchScalarGridSpec(
        num_scalar_prefetch=0,
        grid=(n_tiles,),
        in_specs=[
            pl.BlockSpec((D, tb), lambda i: (0, i)),     # xT batch tile (lane-dense)
            pl.BlockSpec((DH, D), rep),                  # block-diag W1^T
            pl.BlockSpec((DH, 1), rep),                  # b1
            pl.BlockSpec((D + 1, DH), rep),              # block-diag W2 + total row
            pl.BlockSpec((D + 1, 1), rep),               # b2 + sum(b2)
        ],
        out_specs=[
            pl.BlockSpec((1, tb), lambda i: (0, i)),     # total^T tile
            pl.BlockSpec((D, tb), lambda i: (0, i)),     # contribs^T tile
        ],
    )

    totalT, contribsT = pl.pallas_call(
        nam_kernel,
        out_shape=(
            jax.ShapeDtypeStruct((1, B_pad), xT.dtype),
            jax.ShapeDtypeStruct((D, B_pad), xT.dtype),
        ),
        grid_spec=grid_spec,
        compiler_params=pltpu.CompilerParams(
            dimension_semantics=("parallel",),           # megacore on v7x
            vmem_limit_bytes=vmem_limit,
        ),
    )(xT, w1T_blk, b1_col, w2_aug, b2_aug)

    if B_pad != B:
        # Padded batch columns hold relu(b1)*w2 + b2 garbage; never expose them.
        totalT = totalT[:, :B]
        contribsT = contribsT[:, :B]
    return totalT, contribsT


@functools.partial(jax.jit, static_argnames=("tb",))
def nam_forward(x, w1, b1, w2, b2, *, tb=32768):
    """PyTorch-compatible interface: x (B, D) -> (total (B,1), contribs (B,D)).

    Pays two boundary transposes for interface compatibility; callers that can
    keep data feature-major should use nam_forward_feature_major directly.
    """
    totalT, contribsT = nam_forward_feature_major(jnp.transpose(x), w1, b1, w2, b2, tb=tb)
    return jnp.transpose(totalT), jnp.transpose(contribsT)


def nam_reference(x, w1, b1, w2, b2):
    h = jnp.maximum(x[:, :, None] * w1[None, :, :] + b1[None, :, :], 0.0)
    contribs = jnp.sum(h * w2[None, :, :], axis=-1) + b2[:, 0][None, :]
    return jnp.sum(contribs, axis=1, keepdims=True), contribs


if __name__ == "__main__":
    B, D, H = 256, 4, 32   # small shapes; tile clamps to 128 -> 2-tile grid

    key = jax.random.PRNGKey(0)
    kx, k1, k2, k3, k4 = jax.random.split(key, 5)

    x = jax.random.normal(kx, (B, D), dtype=jnp.float32)
    # Deterministic per-feature FeatureNet parameters (PyTorch-style scales).
    w1 = jax.random.uniform(k1, (D, H), jnp.float32, -1.0, 1.0)
    b1 = jax.random.uniform(k2, (D, H), jnp.float32, -1.0, 1.0)
    w2 = jax.random.uniform(k3, (D, H), jnp.float32, -1.0, 1.0) / jnp.sqrt(H)
    b2 = jax.random.uniform(k4, (D, 1), jnp.float32, -1.0, 1.0) / jnp.sqrt(H)

    # PyTorch-compatible path.
    total, contribs = nam_forward(x, w1, b1, w2, b2)
    jax.block_until_ready((total, contribs))

    ref_total, ref_contribs = nam_reference(x, w1, b1, w2, b2)
    assert total.shape == (B, 1) and contribs.shape == (B, D)
    assert jnp.allclose(contribs, ref_contribs, atol=1e-5, rtol=1e-5)
    assert jnp.allclose(total, ref_total, atol=1e-5, rtol=1e-5)

    # Zero-copy feature-major path + batch-padding path (B not a lane multiple).
    B2 = 300
    x2 = jax.random.normal(jax.random.PRNGKey(1), (B2, D), dtype=jnp.float32)
    totalT2, contribsT2 = nam_forward_feature_major(jnp.transpose(x2), w1, b1, w2, b2)
    jax.block_until_ready((totalT2, contribsT2))

    ref_total2, ref_contribs2 = nam_reference(x2, w1, b1, w2, b2)
    assert totalT2.shape == (1, B2) and contribsT2.shape == (D, B2)
    assert jnp.allclose(jnp.transpose(contribsT2), ref_contribs2, atol=1e-5, rtol=1e-5)
    assert jnp.allclose(jnp.transpose(totalT2), ref_total2, atol=1e-5, rtol=1e-5)

    print("KERNEL_OK")
</pallas_src>

<mosaic_0001>
module attributes {stable_mosaic.version = 11 : i64} {
  func.func @nam_kernel(%arg0: i32, %arg1: memref<4x128xf32, #tpu.memory_space<vmem>>, %arg2: memref<128x4xf32, #tpu.memory_space<vmem>>, %arg3: memref<128x1xf32, #tpu.memory_space<vmem>>, %arg4: memref<5x128xf32, #tpu.memory_space<vmem>>, %arg5: memref<5x1xf32, #tpu.memory_space<vmem>>, %arg6: memref<1x128xf32, #tpu.memory_space<vmem>>, %arg7: memref<4x128xf32, #tpu.memory_space<vmem>>) attributes {dimension_semantics = [#tpu.dimension_semantics<parallel>], iteration_bounds = array<i64: 2>, scalar_prefetch = 0 : i64, scratch_operands = 0 : i64, tpu.core_type = #tpu.core_type<tc>, window_params = [{transform_indices = @transform_0, window_bounds = array<i64: 4, 128>}, {pipeline_mode = #tpu.pipeline_mode<synchronous>, transform_indices = @transform_1, window_bounds = array<i64: 128, 4>}, {pipeline_mode = #tpu.pipeline_mode<synchronous>, transform_indices = @transform_2, window_bounds = array<i64: 128, 1>}, {pipeline_mode = #tpu.pipeline_mode<synchronous>, transform_indices = @transform_3, window_bounds = array<i64: 5, 128>}, {pipeline_mode = #tpu.pipeline_mode<synchronous>, transform_indices = @transform_4, window_bounds = array<i64: 5, 1>}, {transform_indices = @transform_5, window_bounds = array<i64: 1, 128>}, {transform_indices = @transform_6, window_bounds = array<i64: 4, 128>}]} {
    %c0 = arith.constant 0 : index
    %c0_0 = arith.constant 0 : index
    %0 = vector.load %arg1[%c0, %c0_0] : memref<4x128xf32, #tpu.memory_space<vmem>>, vector<4x128xf32>
    %c0_1 = arith.constant 0 : index
    %c0_2 = arith.constant 0 : index
    %1 = vector.load %arg2[%c0_1, %c0_2] : memref<128x4xf32, #tpu.memory_space<vmem>>, vector<128x4xf32>
    %cst = arith.constant dense<0.000000e+00> : vector<128x128xf32>
    %2 = tpu.matmul %1, %0, %cst {dimension_numbers = #tpu.dot_dimension_numbers<[1], [0], [0], [1], [0, 0, 1, 1], [], []>} : vector<128x4xf32>, vector<4x128xf32>, vector<128x128xf32> -> vector<128x128xf32>
    %c0_3 = arith.constant 0 : index
    %c0_4 = arith.constant 0 : index
    %3 = vector.load %arg3[%c0_3, %c0_4] : memref<128x1xf32, #tpu.memory_space<vmem>>, vector<128x1xf32>
    %4 = vector.broadcast %3 : vector<128x1xf32> to vector<128x128xf32>
    %5 = arith.addf %2, %4 : vector<128x128xf32>
    %cst_5 = arith.constant 0.000000e+00 : f32
    %6 = vector.broadcast %cst_5 : f32 to vector<128x128xf32>
    %7 = arith.maximumf %5, %6 : vector<128x128xf32>
    %c0_6 = arith.constant 0 : index
    %c0_7 = arith.constant 0 : index
    %8 = vector.load %arg4[%c0_6, %c0_7] : memref<5x128xf32, #tpu.memory_space<vmem>>, vector<5x128xf32>
    %cst_8 = arith.constant dense<0.000000e+00> : vector<5x128xf32>
    %9 = tpu.matmul %8, %7, %cst_8 {dimension_numbers = #tpu.dot_dimension_numbers<[1], [0], [0], [1], [0, 0, 1, 1], [], []>} : vector<5x128xf32>, vector<128x128xf32>, vector<5x128xf32> -> vector<5x128xf32>
    %c0_9 = arith.constant 0 : index
    %c0_10 = arith.constant 0 : index
    %10 = vector.load %arg5[%c0_9, %c0_10] : memref<5x1xf32, #tpu.memory_space<vmem>>, vector<5x1xf32>
    %11 = vector.broadcast %10 : vector<5x1xf32> to vector<5x128xf32>
    %12 = arith.addf %9, %11 : vector<5x128xf32>
    %13 = vector.extract_strided_slice %12 {offsets = [0, 0], sizes = [4, 128], strides = [1, 1]} : vector<5x128xf32> to vector<4x128xf32>
    %c0_11 = arith.constant 0 : index
    %c0_12 = arith.constant 0 : index
    %14 = vector.load %arg7[%c0_11, %c0_12] : memref<4x128xf32, #tpu.memory_space<vmem>>, vector<4x128xf32>
    tpu.vector_store %arg7[%c0_11, %c0_12], %13 {strides = array<i32>} : memref<4x128xf32, #tpu.memory_space<vmem>>, vector<4x128xf32>,
    %15 = vector.extract_strided_slice %12 {offsets = [4, 0], sizes = [1, 128], strides = [1, 1]} : vector<5x128xf32> to vector<1x128xf32>
    %c0_13 = arith.constant 0 : index
    %c0_14 = arith.constant 0 : index
    %16 = vector.load %arg6[%c0_13, %c0_14] : memref<1x128xf32, #tpu.memory_space<vmem>>, vector<1x128xf32>
    tpu.vector_store %arg6[%c0_13, %c0_14], %15 {strides = array<i32>} : memref<1x128xf32, #tpu.memory_space<vmem>>, vector<1x128xf32>,
    return
  }
  func.func @transform_0(%arg0: i32) -> (i32, i32) {
    %c0_i32 = arith.constant 0 : i32
    %c0_i32_0 = arith.constant 0 : i32
    return %c0_i32, %arg0 : i32, i32
  }
  func.func @transform_1(%arg0: i32) -> (i32, i32) {
    %c0_i32 = arith.constant 0 : i32
    %c0_i32_0 = arith.constant 0 : i32
    %c0_i32_1 = arith.constant 0 : i32
    return %c0_i32, %c0_i32_0 : i32, i32
  }
  func.func @transform_2(%arg0: i32) -> (i32, i32) {
    %c0_i32 = arith.constant 0 : i32
    %c0_i32_0 = arith.constant 0 : i32
    %c0_i32_1 = arith.constant 0 : i32
    return %c0_i32, %c0_i32_0 : i32, i32
  }
  func.func @transform_3(%arg0: i32) -> (i32, i32) {
    %c0_i32 = arith.constant 0 : i32
    %c0_i32_0 = arith.constant 0 : i32
    %c0_i32_1 = arith.constant 0 : i32
    return %c0_i32, %c0_i32_0 : i32, i32
  }
  func.func @transform_4(%arg0: i32) -> (i32, i32) {
    %c0_i32 = arith.constant 0 : i32
    %c0_i32_0 = arith.constant 0 : i32
    %c0_i32_1 = arith.constant 0 : i32
    return %c0_i32, %c0_i32_0 : i32, i32
  }
  func.func @transform_5(%arg0: i32) -> (i32, i32) {
    %c0_i32 = arith.constant 0 : i32
    %c0_i32_0 = arith.constant 0 : i32
    return %c0_i32, %arg0 : i32, i32
  }
  func.func @transform_6(%arg0: i32) -> (i32, i32) {
    %c0_i32 = arith.constant 0 : i32
    %c0_i32_0 = arith.constant 0 : i32
    return %c0_i32, %arg0 : i32, i32
  }
}

</mosaic_0001>

<bundles_post_ra>
// kernel: nam_forward_feature_major.1
= control target key start
LH: loop header
LB: loop body
LE: loop exit
PB: predicated region body
PF: predicated region fallthrough
CT: control target
= control target key end

     0   :  { %12 = vsyncpa [#allocation3], 0  ;;  %s1376_s0 = inlined_call_operand.vmem [shape: f32[4,256], index: 0, kind: input, shape index: {}]   ;;  %s1377_s1 = inlined_call_operand.vmem [shape: f32[128,4], index: 1, kind: input, shape index: {}]   ;;  %s1378_s2 = inlined_call_operand.vmem [shape: f32[128,1], index: 2, kind: input, shape index: {}]   ;;  %s1379_s3 = inlined_call_operand.vmem [shape: f32[5,128], index: 3, kind: input, shape index: {}]   ;;  %s1380_s4 = inlined_call_operand.vmem [shape: f32[5,1], index: 4, kind: input, shape index: {}]   ;;  %s1381_s5 = inlined_call_operand.hbm [shape: f32[1,256], index: 5, kind: output, shape index: {0}]   ;;  %s1382_s6 = inlined_call_operand.hbm [shape: f32[4,256], index: 6, kind: output, shape index: {1}]  }
   0x1   :  { %14 = vsyncpa [#allocation3 + $0x1], 0 }
   0x2   :  { %15 = vsyncpa [#allocation5], 0 }
   0x3   :  { %17 = vsyncpa [#allocation5 + $0x1], 0  ;;  %s1115_s21 = smov 0   ;;  %s1117_s22 = smov 0  }
   0x4   :  { %s1119_s23 = smov 0   ;;  %s1121_s24 = smov 0  }
   0x5 LB: > { %s1136_s25 = sadd.s32 4294967295, %s1072_s24   ;;  %s781_s26 = sadd.s32 4294967294, %s1072_s24   ;;  %s1072_s24 = sphi %s1121_s24, %s1388_s24   ;;  %s1068_s23 = sphi %s1119_s23, %s1387_s23   ;;  %s1064_s22 = sphi %s1117_s22, %s1386_s22   ;;  %s1060_s21 = sphi %s1115_s21, %s1385_s21  }
   0x6   : > { %s1140_s27 = sadd.s32 1, %s1072_s24   ;;  %s140_s28 = sadd.s32 1, %s1068_s23 }
   0x7   : > { %s137_s29 = ssub.s32 %s1072_s24, %s1140_s27  ;;  %p150_p0 = scmp.ne.s32.totalorder %s1068_s23, %s1064_s22 }
   0x8   : > { %p138_p1 = scmp.eq.s32.totalorder %s137_s29, 0  ;;  %p151_p2 = scmp.eq.s32.totalorder %s1136_s25, 1 }
   0x9   : > { %p156_p3 = scmp.ne.s32.totalorder %s1064_s22, %s1060_s21  ;;  %p157_p4 = scmp.eq.s32.totalorder %s781_s26, 1 }
   0xa   : > { %s1151_s30 = scalar_select %p138_p1, %s1068_s23, %s140_s28  }
   0xb   : > { %p1153_p5 = por %p151_p2, %p150_p0  ;;  %p1157_p6 = por %p157_p4, %p156_p3 }
   0xc   : > { %p784_p7 = scmp.ge.s32.totalorder %s1072_s24, 1  ;;  %p220_p8 = scmp.lt.s32.totalorder %s1072_s24, 3 }
   0xe   : > { %p221_p9 = pnand %p784_p7, %p220_p8 }
   0xf   : > { %p253_p10 = scmp.lt.s32.totalorder (!%p221_p9), %s1136_s25, 1  ;;  %v258_v0 = vld [vmem:[%s1377_s1] sm:$0xff] (!%p221_p9)  ;;  %vm370_vm0 = vcmask (!%p221_p9), 31744   ;;  %v1074_v1 = vmov (!%p221_p9), 0   ;;  %vm419_vm1 = vcmask (!%p221_p9), 1043456   ;;  %v259_v4 = vld [vmem:[%s1377_s1 + $0x8] sm:$0xff] (!%p221_p9) }
  0x10   : > { %224 = sbr.rel (%p221_p9) target bundleno = 531 (0x213), region = 40  ;;  %845 = vmatprep.mubr.msk.f32.mxu0 (!%p221_p9), %vm370_vm0, %v258_v0  ;;  %976 = vset.pattern.permute.xlu0 (!%p221_p9), %v1074_v1  ;;  %v274_v2 = vld [vmem:[%s1378_s2] sm:$0xff] (!%p221_p9)  ;;  %v276_v5 = vld [vmem:[%s1378_s2 + $0x10] sm:$0xff] (!%p221_p9)  ;;  %v275_v7 = vld [vmem:[%s1378_s2 + $0x8] sm:$0xff] (!%p221_p9)  ;;  %v1075_v35 = vmov (!%p221_p9), 0.0|0.0   ;;  %vm1076_vm2 = vmmov (!%p221_p9), 0  }
  0x11   : > { %977 = vset.pattern.permute.xlu1 (!%p221_p9), %v1074_v1  ;;  %292 = vperm.xlu0 (!%p221_p9), %976, %v274_v2   ;;  %v260_v6 = vld [vmem:[%s1377_s1 + $0x10] sm:$0xff] (!%p221_p9)  ;;  %v277_v8 = vld [vmem:[%s1378_s2 + $0x18] sm:$0xff] (!%p221_p9)  ;;  %v262_v10 = vld [vmem:[%s1377_s1 + $0x20] sm:$0xff] (!%p221_p9)  ;;  %v1077_v36 = vmov (!%p221_p9), 0.0   ;;  %s1295_s28 = sand.u32 (!%p221_p9), 1, %s1064_s22   ;;  %s805_s9 = sshll.u32 (!%p221_p9), %s1136_s25, 4 }
  0x12   : > { %302 = vperm.xlu1 (!%p221_p9), %977, %v276_v5   ;;  %v261_v9 = vld [vmem:[%s1377_s1 + $0x18] sm:$0xff] (!%p221_p9)  ;;  %v278_v11 = vld [vmem:[%s1378_s2 + $0x20] sm:$0xff] (!%p221_p9)  ;;  %v279_v12 = vld [vmem:[%s1378_s2 + $0x28] sm:$0xff] (!%p221_p9)  ;;  %904 = vmatprep.subr.bf16.mxu1 (!%p221_p9), %v1075_v35  ;;  %s785_s29 = sshll.u32 (!%p221_p9), %s1295_s28, 2  ;;  %s245_s10 = scalar_lea.vmem (!%p221_p9), [#allocation2], %s1295_s28 }
  0x13   : > { %v263_v13 = vld [vmem:[%s1377_s1 + $0x28] sm:$0xff] (!%p221_p9)  ;;  %v264_v14 = vld [vmem:[%s1377_s1 + $0x30] sm:$0xff] (!%p221_p9)  ;;  %v281_v16 = vld [vmem:[%s1378_s2 + $0x38] sm:$0xff] (!%p221_p9)  ;;  %901 = vmatprep.mubr.msk.f32.mxu1 (!%p221_p9), %vm1076_vm2, %v1077_v36  ;;  %s252_s13 = scalar_lea.vmem (!%p221_p9), [#allocation4], %s785_s29  ;;  %s1304_s17 = scalar_lea.hbm (!%p221_p9), %s1381_s5, %s805_s9 }
  0x14   : > { %v280_v15 = vld [vmem:[%s1378_s2 + $0x30] sm:$0xff] (!%p221_p9)  ;;  %v265_v17 = vld [vmem:[%s1377_s1 + $0x38] sm:$0xff] (!%p221_p9)  ;;  %v266_v18 = vld [vmem:[%s1377_s1 + $0x40] sm:$0xff] (!%p221_p9)  ;;  %s694_s14 = sshll.u32 (!%p221_p9), %s252_s13, 4  ;;  %s664_s20 = scalar_lea.sflag (!%p221_p9), [#allocation3], %s1295_s28  ;;  %s1313_s14 = int_to_ptr.vmem [resolvable:$true] %s694_s14 }
  0x15   : > { %297 = vperm.xlu0 (!%p221_p9), %976, %v275_v7   ;;  %v282_v19 = vld [vmem:[%s1378_s2 + $0x40] sm:$0xff] (!%p221_p9)  ;;  %v283_v20 = vld [vmem:[%s1378_s2 + $0x48] sm:$0xff] (!%p221_p9)  ;;  %v268_v22 = vld [vmem:[%s1377_s1 + $0x50] sm:$0xff] (!%p221_p9)  ;;  %s1078_s29 = smov (!%p221_p9), [#allocation2]  }
  0x16   : > { %307 = vperm.xlu1 (!%p221_p9), %977, %v277_v8   ;;  %v267_v21 = vld [vmem:[%s1377_s1 + $0x48] sm:$0xff] (!%p221_p9)  ;;  %v284_v23 = vld [vmem:[%s1378_s2 + $0x50] sm:$0xff] (!%p221_p9)  ;;  %v285_v24 = vld [vmem:[%s1378_s2 + $0x58] sm:$0xff] (!%p221_p9)  ;;  %s982_s9 = sshll.u32 (!%p221_p9), %s1078_s29, 4  ;;  %s983_s9 = int_to_ptr.vmem [resolvable:$false] %s982_s9 }
  0x17   : > { %s254_s11 = scalar_select %p253_p10, %s1136_s25, 1  ;;  %v269_v25 = vld [vmem:[%s1377_s1 + $0x58] sm:$0xff]  ;;  %v270_v26 = vld [vmem:[%s1377_s1 + $0x60] sm:$0xff]  ;;  %v287_v28 = vld [vmem:[%s1378_s2 + $0x68] sm:$0xff] }
  0x18   : > { %v286_v27 = vld [vmem:[%s1378_s2 + $0x60] sm:$0xff]  ;;  %v271_v29 = vld [vmem:[%s1377_s1 + $0x68] sm:$0xff]  ;;  %v272_v30 = vld [vmem:[%s1377_s1 + $0x70] sm:$0xff] }
  0x19   : > { %s786_s12 = sshll.u32 %s254_s11, 2  ;;  %312 = vperm.xlu0 %976, %v278_v11   ;;  %v288_v31 = vld [vmem:[%s1378_s2 + $0x70] sm:$0xff]  ;;  %v289_v32 = vld [vmem:[%s1378_s2 + $0x78] sm:$0xff]  ;;  %v585_v34 = vld [vmem:[%s1380_s4] sm:$0x1f]  ;;  %s681_s11 = sshll.u32 %s245_s10, 4  ;;  %s1306_s11 = int_to_ptr.vmem [resolvable:$true] %s681_s11 }
  0x1a   : > { %s256_s15 = scalar_lea.vmem %s1376_s0, %s786_s12  ;;  %317 = vperm.xlu1 %977, %v279_v12   ;;  %v273_v33 = vld [vmem:[%s1377_s1 + $0x78] sm:$0xff]  ;;  %s806_s12 = sshll.u32 %s1136_s25, 6 }
  0x1b   : > { %v257_v3 = vld [vmem:[%s256_s15] sm:$0xf]  ;;  %s1311_s25 = scalar_lea.hbm %s1382_s6, %s806_s12  ;;  %s978_s26 = scalar_lea.vmem %s1306_s11, 16 }
  0x1c   : > { %843 = vmatprep.subr.msk.mxu0 %vm419_vm1, %v257_v3  ;;  %p979_p11 = scmp.ne.s32.totalorder %s1306_s11, %s978_s26  ;;  %s984_s15 = scalar_lea.vmem %s983_s9, 32 }
  0x1d   : > { %844 = vmatpush3.msk.msra.mxu0 %vm419_vm1, %v257_v3  ;;  %322 = vperm.xlu0 %976, %v280_v15   ;;  %p985_p0 = scmp.lt.s32.totalorder %s1306_s11, %s983_s9  ;;  %p986_p1 = scmp.lt.s32.totalorder %s984_s15, %s978_s26 }
  0x1e   : > { %846 = vmatmul.mubr.msk.f32.vlgmr.msra.gmra.mrb[0].mxu0 %vm370_vm0, %v259_v4  ;;  %327 = vperm.xlu1 %977, %v281_v16   ;;  %p980_p12 = pnand %p979_p11, %p1153_p5 }
  0x1f   : > { %848 = vmatprep.mubr.msk.f32.mxu0 %vm370_vm0, %v260_v6  ;;  %p987_p2 = por %p986_p1, %p985_p0 }
  0x20   : > { %p981_p13 = pneg %p980_p12 }
  0x21   : > { %332 = vperm.xlu0 %976, %v282_v19  }
  0x22   : > { %849 = vmatmul.mubr.msk.f32.gmra.mrb[2].mxu0 %vm370_vm0, %v261_v9  ;;  %337 = vperm.xlu1 %977, %v283_v20   ;;  %p988_p3 = pnand %p987_p2, %p981_p13 }
  0x23   : > { %851 = vmatprep.mubr.msk.f32.mxu0 %vm370_vm0, %v262_v10 }
  0x25   : > { %342 = vperm.xlu0 %976, %v284_v23  }
  0x26   : > { %852 = vmatmul.mubr.msk.f32.gmra.mrb[4].mxu0 %vm370_vm0, %v263_v13  ;;  %347 = vperm.xlu1 %977, %v285_v24  }
  0x27   : > { %854 = vmatprep.mubr.msk.f32.mxu0 %vm370_vm0, %v264_v14 }
  0x29   : > { %352 = vperm.xlu0 %976, %v286_v27  }
  0x2a   : > { %855 = vmatmul.mubr.msk.f32.gmra.mrb[6].mxu0 %vm370_vm0, %v265_v17  ;;  %357 = vperm.xlu1 %977, %v287_v28  }
  0x2b   : > { %857 = vmatprep.mubr.msk.f32.mxu0 %vm370_vm0, %v266_v18 }
  0x2d   : > { %362 = vperm.xlu0 %976, %v288_v31  }
  0x2e   : > { %858 = vmatmul.mubr.msk.f32.gmra.mrb[8].mxu0 %vm370_vm0, %v267_v21  ;;  %367 = vperm.xlu1 %977, %v289_v32  }
  0x2f   : > { %860 = vmatprep.mubr.msk.f32.mxu0 %vm370_vm0, %v268_v22 }
  0x31   : > { %588 = vperm.xlu0 %976, %v585_v34  }
  0x32   : > { %861 = vmatmul.mubr.msk.f32.gmra.mrb[10].mxu0 %vm370_vm0, %v269_v25 }
  0x33   : > { %863 = vmatprep.mubr.msk.f32.mxu0 %vm370_vm0, %v270_v26 }
  0x36   : > { %864 = vmatmul.mubr.msk.f32.gmra.mrb[12].mxu0 %vm370_vm0, %v271_v29 }
  0x37   : > { %866 = vmatprep.mubr.msk.f32.mxu0 %vm370_vm0, %v272_v30 }
  0x3a   : > { %867 = vmatmul.mubr.msk.f32.gmra.mrb[14].mxu0 %vm370_vm0, %v273_v33 }
  0x90   : > { %v293_v38 = vpop.permute.xlu0 %292 }
  0x91   : > { %v303_v37 = vpop.permute.xlu1 %302 }
  0x94   : > { %v298_v40 = vpop.permute.xlu0 %297 }
  0x95   : > { %v308_v39 = vpop.permute.xlu1 %307 }
  0x98   : > { %v313_v42 = vpop.permute.xlu0 %312 }
  0x99   : > { %v318_v41 = vpop.permute.xlu1 %317 }
  0x9c   : > { %v323_v51 = vpop.permute.xlu0 %322 }
  0x9d   : > { %v328_v48 = vpop.permute.xlu1 %327 }
  0xa0   : > { %v333_v0 = vpop.permute.xlu0 %332 }
  0xa1   : > { %v338_v61 = vpop.permute.xlu1 %337 }
  0xa4   : > { %v343_v12 = vpop.permute.xlu0 %342 }
  0xa5   : > { %v348_v9 = vpop.permute.xlu1 %347 }
  0xa8   : > { %v353_v25 = vpop.permute.xlu0 %352 }
  0xa9   : > { %v358_v22 = vpop.permute.xlu1 %357 }
  0xad   : > { %v368_v34 = vpop.permute.xlu1 %367 }
  0xf1   : > { %v847_v43 = vpop.f32.mrb[0].mxu0 }
  0xf2   : > { %v495_v44 = vadd.f32 %v847_v43, %v298_v40  ;;  %v489_v45 = vpop.f32.mrb[1].mxu0 }
  0xf3   : > { %v490_v46 = vadd.f32 %v489_v45, %v293_v38  ;;  %v363_v38 = vpop.permute.xlu0 %362 }
  0xf4   : > { %v569_v47 = vmax.f32 %v495_v44, 0.0 }
  0xf5   : > { %v568_v49 = vmax.f32 %v490_v46, 0.0  ;;  %v850_v50 = vpop.f32.mrb[2].mxu0  ;;  %v584_v46 = vld [vmem:[%s1379_s3] sm:$0x1f] }
  0xf6   : > { %v505_v52 = vadd.f32 %v850_v50, %v308_v39  ;;  %v499_v53 = vpop.f32.mrb[3].mxu0 }
  0xf7   : > { %v500_v54 = vadd.f32 %v499_v53, %v303_v37  ;;  %v905_v55 = vpack.c.bf16 %v569_v47, %v568_v49 }
  0xf8   : > { %v571_v56 = vmax.f32 %v505_v52, 0.0 }
  0xf9   : > { %v570_v57 = vmax.f32 %v500_v54, 0.0  ;;  %v853_v58 = vpop.f32.mrb[4].mxu0  ;;  %906 = vmatpush3.bf16.msra.mxu1 %v905_v55 }
  0xfa   : > { %v515_v59 = vadd.f32 %v853_v58, %v318_v41  ;;  %v509_v60 = vpop.f32.mrb[5].mxu0  ;;  %907 = vmatprep.subr.bf16.mxu1 %v1075_v35 }
  0xfb   : > { %v908_v62 = vpack.c.bf16 %v571_v56, %v570_v57  ;;  %v510_v63 = vadd.f32 %v509_v60, %v313_v42 }
  0xfc   : > { %v573_v1 = vmax.f32 %v515_v59, 0.0 }
  0xfd   : > { %v572_v2 = vmax.f32 %v510_v63, 0.0  ;;  %v856_v3 = vpop.f32.mrb[6].mxu0  ;;  %909 = vmatpush3.bf16.msra.mxu1 %v908_v62 }
  0xfe   : > { %v525_v4 = vadd.f32 %v856_v3, %v328_v48  ;;  %v519_v5 = vpop.f32.mrb[7].mxu0  ;;  %910 = vmatprep.subr.bf16.mxu1 %v1075_v35 }
  0xff   : > { %v911_v6 = vpack.c.bf16 %v573_v1, %v572_v2  ;;  %v520_v7 = vadd.f32 %v519_v5, %v323_v51 }
 0x100   : > { %v575_v8 = vmax.f32 %v525_v4, 0.0 }
 0x101   : > { %v574_v10 = vmax.f32 %v520_v7, 0.0  ;;  %v859_v11 = vpop.f32.mrb[8].mxu0  ;;  %912 = vmatpush3.bf16.msra.mxu1 %v911_v6 }
 0x102   : > { %v535_v13 = vadd.f32 %v859_v11, %v338_v61  ;;  %v529_v14 = vpop.f32.mrb[9].mxu0  ;;  %913 = vmatprep.subr.bf16.mxu1 %v1075_v35 }
 0x103   : > { %v914_v15 = vpack.c.bf16 %v575_v8, %v574_v10  ;;  %v530_v16 = vadd.f32 %v529_v14, %v333_v0 }
 0x104   : > { %v577_v17 = vmax.f32 %v535_v13, 0.0 }
 0x105   : > { %v576_v18 = vmax.f32 %v530_v16, 0.0  ;;  %v862_v19 = vpop.f32.mrb[10].mxu0  ;;  %915 = vmatpush3.bf16.msra.mxu1 %v914_v15 }
 0x106   : > { %v545_v20 = vadd.f32 %v862_v19, %v348_v9  ;;  %v539_v21 = vpop.f32.mrb[11].mxu0  ;;  %916 = vmatprep.subr.bf16.mxu1 %v1075_v35 }
 0x107   : > { %v917_v23 = vpack.c.bf16 %v577_v17, %v576_v18  ;;  %v540_v24 = vadd.f32 %v539_v21, %v343_v12 }
 0x108   : > { %v579_v26 = vmax.f32 %v545_v20, 0.0 }
 0x109   : > { %v578_v27 = vmax.f32 %v540_v24, 0.0  ;;  %v865_v28 = vpop.f32.mrb[12].mxu0  ;;  %918 = vmatpush3.bf16.msra.mxu1 %v917_v23 }
 0x10a   : > { %v555_v29 = vadd.f32 %v865_v28, %v358_v22  ;;  %v549_v30 = vpop.f32.mrb[13].mxu0  ;;  %919 = vmatprep.subr.bf16.mxu1 %v1075_v35 }
 0x10b   : > { %v920_v31 = vpack.c.bf16 %v579_v26, %v578_v27  ;;  %v550_v32 = vadd.f32 %v549_v30, %v353_v25 }
 0x10c   : > { %v581_v33 = vmax.f32 %v555_v29, 0.0 }
 0x10d   : > { %v580_v36 = vmax.f32 %v550_v32, 0.0  ;;  %v868_v37 = vpop.f32.mrb[14].mxu0  ;;  %921 = vmatpush3.bf16.msra.mxu1 %v920_v31 }
 0x10e   : > { %v565_v39 = vadd.f32 %v868_v37, %v368_v34  ;;  %v559_v40 = vpop.f32.mrb[15].mxu0  ;;  %922 = vmatprep.subr.bf16.mxu1 %v1075_v35 }
 0x10f   : > { %v923_v41 = vpack.c.bf16 %v581_v33, %v580_v36  ;;  %v560_v42 = vadd.f32 %v559_v40, %v363_v38 }
 0x110   : > { %v583_v43 = vmax.f32 %v565_v39, 0.0 }
 0x111   : > { %v582_v44 = vmax.f32 %v560_v42, 0.0  ;;  %924 = vmatpush3.bf16.msra.mxu1 %v923_v41 }
 0x112   : > { %925 = vmatprep.subr.bf16.mxu1 %v1075_v35  ;;  %v589_v35 = vpop.permute.xlu0 %588 }
 0x113   : > { %v926_v45 = vpack.c.bf16 %v583_v43, %v582_v44 }
 0x115   : > { %927 = vmatpush3.bf16.msra.mxu1 %v926_v45 }
 0x118   : > { %902 = vmatmul.mubr.f32.vlgmr.msra.gmra.mrb[0].mxu1 %v584_v46 }
 0x1eb   : > { %v657_v47 = vpop.f32.mrb[0].mxu1 }
 0x1ec   : > { %v658_v48 = vadd.f32 %v657_v47, %v589_v35  ;;  %v903_v49 = vpop.f32.mrb[1].mxu1 }
 0x1ee   : > { %661 = vst [vmem:[%s252_s13] sm:$0xf] %v658_v48  ;;  %662 = vst [vmem:[%s245_s10 - $0x4] sm:$0x10] %v658_v48 }
 0x1ef   : > { %991 = shalt.err (!%p988_p3)
}
 0x1f0   : > { %s992_s10 = scalar_lea.hbm %s1304_s17, 16  ;;  %s996_s16 = scalar_lea.hbm %s1381_s5, 32 }
 0x1f1   : > { %p993_p4 = scmp.ne.s32.totalorder %s1304_s17, %s992_s10  ;;  %p997_p9 = scmp.lt.u32.totalorder %s1304_s17, %s1381_s5 }
 0x1f2   : > { %p998_p10 = scmp.lt.u32.totalorder %s996_s16, %s992_s10  ;;  %p1000_p12 = scmp.lt.u32.totalorder %s992_s10, %s1304_s17 }
 0x1f3   : > { %p994_p7 = pnand %p993_p4, %p1153_p5 }
 0x1f4   : > { %p999_p11 = por %p998_p10, %p997_p9 }
 0x1f5   : > { %p995_p8 = pneg %p994_p7 }
 0x1f6   : > { %p1001_p13 = por %p1000_p12, %p999_p11 }
 0x1f8   : > { %p1002_p0 = pnand %p1001_p13, %p995_p8 }
 0x1fa   : > { %1005 = shalt.err (!%p1002_p0)
}
 0x1fb   : > { %928 = dma.vmem_to_hbm [thread:$0]  (%p1153_p5), %s1306_s11, 16, %s1304_s17, %s664_s20  }
 0x1fc   : > { %s668_s26 = scalar_lea.sflag [#allocation5], %s1295_s28  ;;  %s1006_s29 = scalar_lea.vmem %s1313_s14, 64 }
 0x1fd   : > { %p1007_p1 = scmp.ne.s32.totalorder %s1313_s14, %s1006_s29  ;;  %s1079_s9 = smov [#allocation4]  }
 0x1fe   : > { %s1010_s15 = sshll.u32 %s1079_s9, 4  ;;  %s1011_s15 = int_to_ptr.vmem [resolvable:$false] %s1010_s15 }
 0x1ff   : > { %p1008_p2 = pnand %p1007_p1, %p1153_p5  ;;  %s1012_s10 = scalar_lea.vmem %s1011_s15, 128 }
 0x200   : > { %p1013_p4 = scmp.lt.s32.totalorder %s1313_s14, %s1011_s15  ;;  %p1014_p7 = scmp.lt.s32.totalorder %s1012_s10, %s1006_s29 }
 0x201   : > { %p1009_p3 = pneg %p1008_p2 }
 0x202   : > { %p1015_p8 = por %p1014_p7, %p1013_p4 }
 0x204   : > { %p1016_p9 = pnand %p1015_p8, %p1009_p3 }
 0x206   : > { %1019 = shalt.err (!%p1016_p9)
}
 0x207   : > { %s1020_s28 = scalar_lea.hbm %s1311_s25, 64  ;;  %s1024_s20 = scalar_lea.hbm %s1382_s6, 128 }
 0x208   : > { %p1021_p10 = scmp.ne.s32.totalorder %s1311_s25, %s1020_s28  ;;  %p1025_p13 = scmp.lt.u32.totalorder %s1311_s25, %s1382_s6 }
 0x209   : > { %p1026_p0 = scmp.lt.u32.totalorder %s1024_s20, %s1020_s28  ;;  %p1028_p2 = scmp.lt.u32.totalorder %s1020_s28, %s1311_s25 }
 0x20a   : > { %p1022_p11 = pnand %p1021_p10, %p1153_p5 }
 0x20b   : > { %p1027_p1 = por %p1026_p0, %p1025_p13 }
 0x20c   : > { %p1023_p12 = pneg %p1022_p11 }
 0x20d   : > { %p1029_p3 = por %p1028_p2, %p1027_p1 }
 0x20f   : > { %p1030_p4 = pnand %p1029_p3, %p1023_p12 }
 0x211   : > { %1033 = shalt.err (!%p1030_p4)
}
 0x212   : > { %929 = dma.vmem_to_hbm [thread:$0]  (%p1153_p5), %s1313_s14, 64, %s1311_s25, %s668_s26  }
 0x213 PF: > { %p939_p7 = scmp.ge.s32.totalorder %s1072_s24, 2  ;;  %s706_s16 = sand.u32 1, %s1060_s21  }
 0x214   : > { %s707_s18 = scalar_lea.sflag [#allocation3], %s706_s16 }
 0x215   : > { %p933_p8 = pnand %p939_p7, %p1157_p6 }
 0x217   : > { %1051 = dma.done.wait (!%p933_p8), %s707_s18, 16  }
 0x218   : > { %1053 = vsyncadd (!%p933_p8), %s707_s18, 4294967280  ;;  %s715_s19 = scalar_lea.sflag [#allocation5], %s706_s16 }
 0x219   : > { %1055 = dma.done.wait (!%p933_p8), %s715_s19, 64  }
 0x21a   : > { %1057 = vsyncadd (!%p933_p8), %s715_s19, 4294967232  ;;  %p20_p5 = scmp.ge.s32.totalorder %s1140_s27, 4   ;;  %s1385_s21 = smov %s1064_s22 }
 0x21b   : > { %s1386_s22 = smov %s1068_s23  ;;  %s1387_s23 = smov %s1151_s30 }
 0x21c   : > { %s1388_s24 = smov %s1140_s27  ;;  %22 = sbr.rel (!%p20_p5) target bundleno = 5 (0x5), region = 92 }
 0x223   :  { %720 = vsyncpa [#allocation3], 1 }
 0x224   :  { %722 = vsyncpa [#allocation3 + $0x1], 1 }
 0x225   :  { %723 = vsyncpa [#allocation5], 1 }
 0x226   :  { %725 = vsyncpa [#allocation5 + $0x1], 1 }

</bundles_post_ra>
